<compile_context>
chip_gen: v7x
topology: tpu7x:2x2x1
jax: 0.10.0
libtpu: 0.0.40
codegen_flags: <defaults>
</compile_context>

<pallas_src>
import jax
import jax.numpy as jnp
from jax.experimental import pallas as pl
from jax.experimental.pallas import tpu as pltpu


def _bmm_attention_kernel(q_ref, k_ref, v_ref, mask_ref, ctx_ref, attn_ref):
    q = q_ref[...]                       # (TB, D)
    k = k_ref[...]                       # (TB, T, D)
    v = v_ref[...]                       # (TB, T, Dv)
    masked = mask_ref[...] != 0          # (TB, T) bool, True == drop

    d = k.shape[-1]
    scale = 1.0 / (float(d) ** 0.5)

    # energy[b, 1, t] = <query[b, :], key[b, t, :]> / sqrt(D)
    # Batched contraction over D -> routed through dot_general (MXU/XLU), no
    # (TB, T, D) broadcast temporary.
    q3 = q[:, None, :].astype(k.dtype)                                  # (TB, 1, D)
    energy = jnp.einsum("bqd,btd->bqt", q3, k,
                        preferred_element_type=jnp.float32)             # (TB, 1, T)
    energy = energy * scale
    energy = jnp.where(masked[:, None, :], -jnp.inf, energy)

    # Numerically stable softmax over T (== torch dim=1).
    e_max = jnp.max(energy, axis=-1, keepdims=True)                     # (TB, 1, 1)
    e = jnp.exp(energy - e_max)                                         # masked -> 0
    denom = jnp.sum(e, axis=-1, keepdims=True)                          # (TB, 1, 1)
    inv = pl.reciprocal(denom, approx=True)                             # EUP slot
    attn3 = e * inv                                                     # (TB, 1, T)

    # context[b, 1, :] = attn[b, 1, :] @ value[b]  (contract over T)
    ctx3 = jnp.einsum("bqt,btd->bqd", attn3.astype(v.dtype), v,
                      preferred_element_type=jnp.float32)               # (TB, 1, Dv)

    ctx_ref[...] = ctx3[:, 0, :].astype(ctx_ref.dtype)
    attn_ref[...] = attn3[:, 0, :].astype(attn_ref.dtype)


def bmm_attention(query, key, value, mask, *, vmem_budget_bytes=20 * 1024 * 1024):
    """query (B,D), key (B,T,D), value (B,T,Dv), mask (B,T) (True/nonzero = masked).

    Returns (context (B,Dv) f32, attention (B,T) f32).
    key/value may be bf16 to halve HBM traffic; accumulation stays f32.
    """
    B, T, D = key.shape
    Dv = value.shape[-1]
    assert query.shape == (B, D)
    assert mask.shape == (B, T)

    mask_i8 = mask.astype(jnp.int8)      # 1 B/elem HBM stream instead of 4 B/elem

    # ---- pick batch block TB against a conservative VMEM budget --------------
    in_item = jnp.dtype(key.dtype).itemsize
    bytes_per_row = (
        (T * D + T * Dv) * in_item                    # key + value block rows
        + D * jnp.dtype(query.dtype).itemsize         # query row
        + T                                           # int8 mask row
        + (Dv + T) * 4                                # f32 output rows
    )
    tb = max(1, int(vmem_budget_bytes // (2 * bytes_per_row)))   # 2x: double buffering
    if tb >= B:
        tb = B                                        # single block (full dims -> valid tiling)
    else:
        tb = max(32, (tb // 32) * 32)                 # keep sublane dim tile-aligned (f32 & int8)
        tb = min(tb, B)

    grid = (pl.cdiv(B, tb),)

    ctx, attn = pl.pallas_call(
        _bmm_attention_kernel,
        out_shape=(
            jax.ShapeDtypeStruct((B, Dv), jnp.float32),
            jax.ShapeDtypeStruct((B, T), jnp.float32),
        ),
        grid=grid,
        in_specs=[
            pl.BlockSpec((tb, D), lambda b: (b, 0)),        # query
            pl.BlockSpec((tb, T, D), lambda b: (b, 0, 0)),  # key
            pl.BlockSpec((tb, T, Dv), lambda b: (b, 0, 0)), # value
            pl.BlockSpec((tb, T), lambda b: (b, 0)),        # mask (int8)
        ],
        out_specs=(
            pl.BlockSpec((tb, Dv), lambda b: (b, 0)),       # context
            pl.BlockSpec((tb, T), lambda b: (b, 0)),        # attention
        ),
        compiler_params=pltpu.CompilerParams(
            dimension_semantics=("parallel",),              # shards across TCs on v7x
            vmem_limit_bytes=32 * 1024 * 1024,              # safe on v5e/v6e/v7x
        ),
    )(query, key, value, mask_i8)
    return ctx, attn


if __name__ == "__main__":
    # bmmAttention has no learnable parameters (__init__ defines none).
    rng = jax.random.PRNGKey(0)
    kq, kk, kv = jax.random.split(rng, 3)

    B, T, D = 2, 8, 32
    Dv = D
    query = jax.random.normal(kq, (B, D), jnp.float32)
    key_t = jax.random.normal(kk, (B, T, D), jnp.float32)
    value = jax.random.normal(kv, (B, T, Dv), jnp.float32)

    # Padding-style mask: second sequence only has 5 valid timesteps.
    lengths = jnp.array([T, 5], dtype=jnp.int32)
    mask = jnp.arange(T, dtype=jnp.int32)[None, :] >= lengths[:, None]   # True = masked

    ctx, attn = bmm_attention(query, key_t, value, mask)
    jax.block_until_ready((ctx, attn))

    # Pure-JAX reference for a sanity check.
    energy_ref = jnp.einsum("btd,bd->bt", key_t, query) / jnp.sqrt(jnp.float32(D))
    energy_ref = jnp.where(mask, -jnp.inf, energy_ref)
    attn_ref = jax.nn.softmax(energy_ref, axis=1)
    ctx_ref = jnp.einsum("bt,btd->bd", attn_ref, value)

    assert attn.shape == (B, T) and ctx.shape == (B, Dv)
    # Tolerance accounts for the approximate (EUP) reciprocal in the softmax.
    assert jnp.allclose(attn, attn_ref, atol=2e-3, rtol=2e-3)
    assert jnp.allclose(ctx, ctx_ref, atol=2e-3, rtol=2e-3)
    print("KERNEL_OK")
</pallas_src>

<mosaic_0001>
module attributes {stable_mosaic.version = 11 : i64} {
  func.func @_bmm_attention_kernel(%arg0: i32, %arg1: memref<2x32xf32, #tpu.memory_space<vmem>>, %arg2: memref<2x8x32xf32, #tpu.memory_space<vmem>>, %arg3: memref<2x8x32xf32, #tpu.memory_space<vmem>>, %arg4: memref<2x8xi8, #tpu.memory_space<vmem>>, %arg5: memref<2x32xf32, #tpu.memory_space<vmem>>, %arg6: memref<2x8xf32, #tpu.memory_space<vmem>>) attributes {dimension_semantics = [#tpu.dimension_semantics<parallel>], iteration_bounds = array<i64: 1>, scalar_prefetch = 0 : i64, scratch_operands = 0 : i64, tpu.core_type = #tpu.core_type<tc>, window_params = [{transform_indices = @transform_0, window_bounds = array<i64: 2, 32>}, {transform_indices = @transform_1, window_bounds = array<i64: 2, 8, 32>}, {transform_indices = @transform_2, window_bounds = array<i64: 2, 8, 32>}, {transform_indices = @transform_3, window_bounds = array<i64: 2, 8>}, {transform_indices = @transform_4, window_bounds = array<i64: 2, 32>}, {transform_indices = @transform_5, window_bounds = array<i64: 2, 8>}]} {
    %c0 = arith.constant 0 : index
    %c0_0 = arith.constant 0 : index
    %0 = vector.load %arg1[%c0, %c0_0] : memref<2x32xf32, #tpu.memory_space<vmem>>, vector<2x32xf32>
    %c0_1 = arith.constant 0 : index
    %c0_2 = arith.constant 0 : index
    %c0_3 = arith.constant 0 : index
    %1 = vector.load %arg2[%c0_1, %c0_2, %c0_3] : memref<2x8x32xf32, #tpu.memory_space<vmem>>, vector<2x8x32xf32>
    %c0_4 = arith.constant 0 : index
    %c0_5 = arith.constant 0 : index
    %c0_6 = arith.constant 0 : index
    %2 = vector.load %arg3[%c0_4, %c0_5, %c0_6] : memref<2x8x32xf32, #tpu.memory_space<vmem>>, vector<2x8x32xf32>
    %c0_7 = arith.constant 0 : index
    %c0_8 = arith.constant 0 : index
    %3 = vector.load %arg4[%c0_7, %c0_8] : memref<2x8xi8, #tpu.memory_space<vmem>>, vector<2x8xi8>
    %c0_i8 = arith.constant 0 : i8
    %4 = vector.broadcast %c0_i8 : i8 to vector<2x8xi8>
    %5 = arith.cmpi ne, %3, %4 : vector<2x8xi8>
    %6 = vector.shape_cast %0 : vector<2x32xf32> to vector<2x1x32xf32>
    "tpu.trace_start"() <{level = 10 : i32, message = "bqd,btd->bqt"}> : () -> ()
    %cst = arith.constant dense<0.000000e+00> : vector<2x1x8xf32>
    %7 = tpu.matmul %6, %1, %cst {dimension_numbers = #tpu.dot_dimension_numbers<[2], [2], [1], [1], [0, 0, 0, 1, 1, 1], [0], [0]>} : vector<2x1x32xf32>, vector<2x8x32xf32>, vector<2x1x8xf32> -> vector<2x1x8xf32>
    "tpu.trace_stop"() : () -> ()
    %cst_9 = arith.constant 0.176776692 : f32
    %8 = vector.broadcast %cst_9 : f32 to vector<2x1x8xf32>
    %9 = arith.mulf %7, %8 : vector<2x1x8xf32>
    %10 = vector.shape_cast %5 : vector<2x8xi1> to vector<2x1x8xi1>
    %cst_10 = arith.constant 0xFF800000 : f32
    %11 = vector.broadcast %cst_10 : f32 to vector<2x1x8xf32>
    %12 = arith.select %10, %11, %9 : vector<2x1x8xi1>, vector<2x1x8xf32>
    %cst_11 = arith.constant dense<0xFF800000> : vector<2x1xf32>
    %13 = vector.multi_reduction <maximumf>, %12, %cst_11 [2] : vector<2x1x8xf32> to vector<2x1xf32>
    %14 = vector.shape_cast %13 : vector<2x1xf32> to vector<2x1x1xf32>
    %15 = vector.broadcast %14 : vector<2x1x1xf32> to vector<2x1x8xf32>
    %16 = arith.subf %12, %15 : vector<2x1x8xf32>
    %17 = math.exp %16 : vector<2x1x8xf32>
    %cst_12 = arith.constant dense<0.000000e+00> : vector<2x1xf32>
    %18 = vector.multi_reduction <add>, %17, %cst_12 [2] : vector<2x1x8xf32> to vector<2x1xf32>
    %19 = vector.shape_cast %18 : vector<2x1xf32> to vector<2x1x1xf32>
    %20 = tpu.reciprocal %19 {approx = true} : vector<2x1x1xf32> -> vector<2x1x1xf32>
    %21 = vector.broadcast %20 : vector<2x1x1xf32> to vector<2x1x8xf32>
    %22 = arith.mulf %17, %21 : vector<2x1x8xf32>
    "tpu.trace_start"() <{level = 10 : i32, message = "bqt,btd->bqd"}> : () -> ()
    %cst_13 = arith.constant dense<0.000000e+00> : vector<2x1x32xf32>
    %23 = tpu.matmul %22, %2, %cst_13 {dimension_numbers = #tpu.dot_dimension_numbers<[2], [1], [1], [2], [0, 0, 0, 1, 1, 2], [0], [0]>} : vector<2x1x8xf32>, vector<2x8x32xf32>, vector<2x1x32xf32> -> vector<2x1x32xf32>
    "tpu.trace_stop"() : () -> ()
    %24 = vector.shape_cast %23 : vector<2x1x32xf32> to vector<2x32xf32>
    %c0_14 = arith.constant 0 : index
    %c0_15 = arith.constant 0 : index
    %25 = vector.load %arg5[%c0_14, %c0_15] : memref<2x32xf32, #tpu.memory_space<vmem>>, vector<2x32xf32>
    tpu.vector_store %arg5[%c0_14, %c0_15], %24 {strides = array<i32>} : memref<2x32xf32, #tpu.memory_space<vmem>>, vector<2x32xf32>,
    %26 = vector.shape_cast %22 : vector<2x1x8xf32> to vector<2x8xf32>
    %c0_16 = arith.constant 0 : index
    %c0_17 = arith.constant 0 : index
    %27 = vector.load %arg6[%c0_16, %c0_17] : memref<2x8xf32, #tpu.memory_space<vmem>>, vector<2x8xf32>
    tpu.vector_store %arg6[%c0_16, %c0_17], %26 {strides = array<i32>} : memref<2x8xf32, #tpu.memory_space<vmem>>, vector<2x8xf32>,
    return
  }
  func.func @transform_0(%arg0: i32) -> (i32, i32) {
    %c0_i32 = arith.constant 0 : i32
    %c0_i32_0 = arith.constant 0 : i32
    return %arg0, %c0_i32 : i32, i32
  }
  func.func @transform_1(%arg0: i32) -> (i32, i32, i32) {
    %c0_i32 = arith.constant 0 : i32
    %c0_i32_0 = arith.constant 0 : i32
    %c0_i32_1 = arith.constant 0 : i32
    return %arg0, %c0_i32, %c0_i32_0 : i32, i32, i32
  }
  func.func @transform_2(%arg0: i32) -> (i32, i32, i32) {
    %c0_i32 = arith.constant 0 : i32
    %c0_i32_0 = arith.constant 0 : i32
    %c0_i32_1 = arith.constant 0 : i32
    return %arg0, %c0_i32, %c0_i32_0 : i32, i32, i32
  }
  func.func @transform_3(%arg0: i32) -> (i32, i32) {
    %c0_i32 = arith.constant 0 : i32
    %c0_i32_0 = arith.constant 0 : i32
    return %arg0, %c0_i32 : i32, i32
  }
  func.func @transform_4(%arg0: i32) -> (i32, i32) {
    %c0_i32 = arith.constant 0 : i32
    %c0_i32_0 = arith.constant 0 : i32
    return %arg0, %c0_i32 : i32, i32
  }
  func.func @transform_5(%arg0: i32) -> (i32, i32) {
    %c0_i32 = arith.constant 0 : i32
    %c0_i32_0 = arith.constant 0 : i32
    return %arg0, %c0_i32 : i32, i32
  }
}

</mosaic_0001>

<bundles_post_ra>
// kernel: tpu_custom_call.1
= control target key start
LH: loop header
LB: loop body
LE: loop exit
PB: predicated region body
PF: predicated region fallthrough
CT: control target
= control target key end

     0   :  { %11 = vsyncpa [#allocation3], 0  ;;  %s780_s0 = inlined_call_operand.hbm [shape: f32[2,32], index: 0, kind: input, shape index: {}]   ;;  %s781_s1 = inlined_call_operand.hbm [shape: f32[2,8,32], index: 1, kind: input, shape index: {}]   ;;  %s782_s2 = inlined_call_operand.hbm [shape: f32[2,8,32], index: 2, kind: input, shape index: {}]   ;;  %s783_s3 = inlined_call_operand.vmem [shape: s8[2,8], index: 3, kind: input, shape index: {}]   ;;  %s784_s4 = inlined_call_operand.hbm [shape: f32[2,32], index: 4, kind: output, shape index: {0}]   ;;  %s785_s5 = inlined_call_operand.hbm [shape: f32[2,8], index: 5, kind: output, shape index: {1}]  }
   0x1   :  { %12 = vsyncpa [#allocation6], 0 }
   0x2   :  { %13 = vsyncpa [#allocation4], 0 }
   0x3   :  { %14 = vsyncpa [#allocation10], 0  ;;  %s660_s18 = smov [#allocation5]   ;;  %s542_s22 = scalar_lea.hbm %s781_s1, 256 }
   0x4   :  { %s30_s19 = sshll.u32 %s660_s18, 4  ;;  %p543_p0 = scmp.ne.s32.totalorder %s781_s1, %s542_s22  ;;  %s31_s19 = int_to_ptr.vmem [resolvable:$true] %s30_s19 }
   0x5   :  { %p546_p1 = scmp.lt.u32.totalorder %s542_s22, %s781_s1 }
   0x7   :  { %p548_p2 = pnand %p546_p1, %p543_p0 }
   0x9   :  { %551 = shalt.err (!%p548_p2)
}
   0xa   :  { %s552_s27 = scalar_lea.vmem %s31_s19, 256  ;;  %p557_p4 = scmp.lt.s32.totalorder %s31_s19, %s31_s19 }
   0xb   :  { %p553_p3 = scmp.ne.s32.totalorder %s31_s19, %s552_s27  ;;  %p558_p5 = scmp.lt.s32.totalorder %s552_s27, %s552_s27 }
   0xd   :  { %p559_p6 = por %p558_p5, %p557_p4 }
   0xf   :  { %p560_p7 = pnand %p559_p6, %p553_p3 }
  0x11   :  { %563 = shalt.err (!%p560_p7)
}
  0x12   :  { %s661_s28 = smov 128   ;;  %s662_s29 = smov 8  }
  0x13   :  { %36 = dma.hbm_to_vmem [thread:$0]  %s781_s1, 256, %s31_s19, [#allocation6], %s661_s28, %s661_s28, %s662_s29  }
  0x14   :  { %s663_s7 = smov [#allocation2]   ;;  %s664_s9 = smov [#allocation7]  }
  0x15   :  { %s21_s8 = sshll.u32 %s663_s7, 4  ;;  %s42_s10 = sshll.u32 %s664_s9, 4  ;;  %s22_s8 = int_to_ptr.vmem [resolvable:$true] %s21_s8  ;;  %s43_s10 = int_to_ptr.vmem [resolvable:$true] %s42_s10 }
  0x16   :  { %s564_s13 = scalar_lea.hbm %s780_s0, 32 }
  0x17   :  { %p565_p8 = scmp.ne.s32.totalorder %s780_s0, %s564_s13  ;;  %p568_p9 = scmp.lt.u32.totalorder %s564_s13, %s780_s0 }
  0x19   :  { %p570_p10 = pnand %p568_p9, %p565_p8 }
  0x1b   :  { %573 = shalt.err (!%p570_p10)
}
  0x1c   :  { %s574_s1 = scalar_lea.vmem %s22_s8, 32  ;;  %p579_p12 = scmp.lt.s32.totalorder %s22_s8, %s22_s8 }
  0x1d   :  { %p575_p11 = scmp.ne.s32.totalorder %s22_s8, %s574_s1  ;;  %p580_p13 = scmp.lt.s32.totalorder %s574_s1, %s574_s1 }
  0x1f   :  { %p581_p0 = por %p580_p13, %p579_p12 }
  0x21   :  { %p582_p1 = pnand %p581_p0, %p575_p11 }
  0x23   :  { %585 = shalt.err (!%p582_p1)
}
  0x24   :  { %24 = dma.hbm_to_vmem [thread:$0]  %s780_s0, 32, %s22_s8, [#allocation3]  }
  0x25   :  { %s586_s22 = scalar_lea.hbm %s782_s2, 256 }
  0x26   :  { %p587_p2 = scmp.ne.s32.totalorder %s782_s2, %s586_s22  ;;  %p590_p3 = scmp.lt.u32.totalorder %s586_s22, %s782_s2 }
  0x28   :  { %p592_p4 = pnand %p590_p3, %p587_p2 }
  0x2a   :  { %595 = shalt.err (!%p592_p4)
}
  0x2b   :  { %s596_s27 = scalar_lea.vmem %s43_s10, 256  ;;  %p601_p6 = scmp.lt.s32.totalorder %s43_s10, %s43_s10 }
  0x2c   :  { %p597_p5 = scmp.ne.s32.totalorder %s43_s10, %s596_s27  ;;  %p602_p7 = scmp.lt.s32.totalorder %s596_s27, %s596_s27 }
  0x2e   :  { %p603_p8 = por %p602_p7, %p601_p6 }
  0x30   :  { %p604_p9 = pnand %p603_p8, %p597_p5 }
  0x32   :  { %607 = shalt.err (!%p604_p9)
}
  0x33   :  { %48 = dma.hbm_to_vmem [thread:$0]  %s782_s2, 256, %s43_s10, [#allocation6], %s661_s28, %s661_s28, %s662_s29  }
  0x34   :  { %652 = dma.done.wait [#allocation3], 32  }
  0x35   :  { %653 = vsyncadd [#allocation3], 4294967264 }
  0x36   :  { %654 = dma.done.wait [#allocation6], 512  }
  0x37   :  { %655 = vsyncadd [#allocation6], 4294966784  ;;  %v81_v0 = vlaneseq  ;;  %v665_v1 = vmov 0.0   ;;  %vm666_vm0 = vmmov 0   ;;  %v667_v2 = vmov 1966171168  }
  0x38   :  { %508 = vmatprep.subr.mxu1 %v665_v1  ;;  %503 = vmatprep.subr.mxu0 %v665_v1  ;;  %v79_v3 = vunpack.c.l.s4 %v667_v2  ;;  %vm92_vm1 = vcmask 261120   ;;  %v64_v7 = vld [vmem:[#allocation5 + $0x8] sm:$0xff]  ;;  %v63_v8 = vld [vmem:[#allocation5] sm:$0xff]  ;;  %v67_v13 = vld [vmem:[%s783_s3] sm:$0x1]  ;;  %v668_v14 = vmov 0  }
  0x39   :  { %510 = vmatprep.mubr.msk.f32.mxu1 %vm666_vm0, %v665_v1  ;;  %v82_v4 = vshrl.u32 %v81_v0, 7  ;;  %505 = vmatprep.mubr.msk.f32.mxu0 %vm666_vm0, %v665_v1  ;;  %v488_v9 = vld.sshfl [vmem:[#allocation2] sm:$0x11 pattern:$0x75316420]  ;;  %vm68_vm2 = vnez %v67_v13  ;;  %vm275_vm9 = vcmask 57344  }
  0x3a   :  { %v80_v5 = vunpack.c.0.s8 %v79_v3  ;;  %509 = vmatpush3.xpose.msk.msra.mxu1 %vm92_vm1, %v64_v7  ;;  %504 = vmatpush3.xpose.msk.msra.mxu0 %vm92_vm1, %v63_v8  ;;  %v77_v10 = vcombine.high %v488_v9, %v488_v9  ;;  %v245_v15 = vsel %vm68_vm2, 16843009, %v668_v14  ;;  %v66_v53 = vld [vmem:[#allocation7 + $0x8] sm:$0xff]  ;;  %v65_v54 = vld [vmem:[#allocation7] sm:$0xff]  ;;  %vm298_vm10 = vcmask 64512   ;;  %s669_s3 = smov [#allocation9]  }
  0x3b   :  { %518 = vmatprep.subr.mxu1 %v665_v1  ;;  %513 = vmatprep.subr.mxu0 %v665_v1  ;;  %v249_v16 = vshrl.u32 %v245_v15, 8  ;;  %v251_v18 = vpack.c.b16 %v245_v15, %v245_v15  ;;  %vm448_vm11 = vcmask 1041409   ;;  %vm456_vm12 = vcmask 58368   ;;  %s474_s29 = sshll.u32 %s669_s3, 4  ;;  %s475_s29 = int_to_ptr.vmem [resolvable:$true] %s474_s29 }
  0x3c   :  { %v83_v6 = vsub.s32 %v80_v5, %v82_v4  ;;  %s608_s6 = scalar_lea.vmem %s475_s29, 32  ;;  %p613_p11 = scmp.lt.s32.totalorder %s475_s29, %s475_s29 }
  0x3d   :  { %v253_v17 = vpack.c.b16 %v249_v16, %v249_v16  ;;  %v252_v20 = vpack.c.b8 %v251_v18, %v251_v18  ;;  %p609_p10 = scmp.ne.s32.totalorder %s475_s29, %s608_s6  ;;  %p614_p12 = scmp.lt.s32.totalorder %s608_s6, %s608_s6 }
  0x3e   :  { %v84_v11 = vrot.slane %v488_v9, %v83_v6  ;;  %v91_v12 = vrot.slane %v77_v10, %v83_v6 }
  0x3f   :  { %v254_v19 = vpack.c.b8 %v253_v17, %v253_v17  ;;  %vm255_vm4 = vnez %v252_v20  ;;  %p615_p13 = por %p614_p12, %p613_p11 }
  0x40   :  { %506 = vmatmul.mubr.msk.f32.vlgmr.msra.gmra.mrb[0].mxu0 %vm92_vm1, %v84_v11  ;;  %511 = vmatmul.mubr.msk.f32.vlgmr.msra.gmra.mrb[0].mxu1 %vm92_vm1, %v91_v12  ;;  %v257_v22 = vsel %vm255_vm4, 16843009, %v668_v14 }
  0x41   :  { %515 = vmatprep.mubr.msk.f32.mxu0 %vm666_vm0, %v665_v1  ;;  %520 = vmatprep.mubr.msk.f32.mxu1 %vm666_vm0, %v665_v1  ;;  %vm256_vm3 = vnez %v254_v19  ;;  %v259_v24 = vunpack.c.0.s8 %v257_v22  ;;  %p616_p0 = pnand %p615_p13, %p609_p10 }
  0x42   :  { %v258_v21 = vsel %vm256_vm3, 16843009, %v668_v14  ;;  %519 = vmatpush3.msra.mxu1 %v66_v53  ;;  %514 = vmatpush3.msra.mxu0 %v65_v54 }
  0x43   :  { %v260_v23 = vunpack.c.0.s8 %v258_v21  ;;  %v261_v26 = vpack.i.b16 %v259_v24, %v259_v24 }
  0x45   :  { %v263_v25 = vpack.i.b16 %v260_v23, %v260_v23  ;;  %v262_v28 = vpack.i.b8 %v261_v26, %v261_v26 }
  0x47   :  { %v264_v27 = vpack.i.b8 %v263_v25, %v263_v25  ;;  %vm265_vm6 = vnez %v262_v28 }
  0x48   :  { %v267_v30 = vsel %vm265_vm6, 16843009, %v668_v14 }
  0x49   :  { %vm266_vm5 = vnez %v264_v27  ;;  %v269_v32 = vunpack.c.0.s8 %v267_v30 }
  0x4a   :  { %v268_v29 = vsel %vm266_vm5, 16843009, %v668_v14 }
  0x4b   :  { %v270_v31 = vunpack.c.0.s8 %v268_v29  ;;  %vm271_vm8 = vcmp.ne.s32.totalorder %v269_v32, 0 }
  0x4d   :  { %vm272_vm7 = vcmp.ne.s32.totalorder %v270_v31, 0 }
 0x113   :  { %v164_v33 = vpop.f32.mrb[0].mxu0  ;;  %v239_v34 = vpop.f32.mrb[0].mxu1 }
 0x114   :  { %v243_v35 = vmul.f32 0.17677669, %v164_v33  ;;  %v507_v36 = vpop.f32.mrb[1].mxu0  ;;  %v244_v37 = vmul.f32 0.17677669, %v239_v34  ;;  %v512_v38 = vpop.f32.mrb[1].mxu1 }
 0x116   :  { %v274_v39 = vsel %vm272_vm7, -inf, %v244_v37  ;;  %v273_v40 = vsel %vm271_vm8, -inf, %v243_v35 }
 0x117   :  { %v279_v41 = vsel %vm275_vm9, %v274_v39, -inf  ;;  %v276_v42 = vsel %vm275_vm9, %v273_v40, -inf }
 0x118   :  { %280 = vmax.xlane.f32.xlu0 %v279_v41 }
 0x11c   :  { %277 = vmax.xlane.f32.xlu0 %v276_v42 }
 0x1a5   :  { %v281_v43 = vpop.xlane.xlu0 %280 }
 0x1a6   :  { %v283_v44 = vsub.f32 %v274_v39, %v281_v43 }
 0x1a8   :  { %v286_v45 = vmul.f32 1.442695, %v283_v44 }
 0x1a9   :  { %v278_v46 = vpop.xlane.xlu0 %277 }
 0x1aa   :  { %534 = vpow2.f32 %v286_v45  ;;  %v282_v47 = vsub.f32 %v273_v40, %v278_v46 }
 0x1ac   :  { %v284_v48 = vmul.f32 1.442695, %v282_v47 }
 0x1ae   :  { %536 = vpow2.f32 %v284_v48 }
 0x1b4   :  { %v535_v49 = vpop.eup %534 }
 0x1b5   :  { %v291_v50 = vsel %vm275_vm9, %v535_v49, 0.0 }
 0x1b6   :  { %292 = vadd.xlane.f32.xlu1 %v291_v50 }
 0x1b8   :  { %v537_v51 = vpop.eup %536 }
 0x1b9   :  { %v288_v52 = vsel %vm275_vm9, %v537_v51, 0.0 }
 0x1ba   :  { %289 = vadd.xlane.f32.xlu1 %v288_v52 }
 0x243   :  { %v293_v55 = vpop.xlane.xlu1 %292 }
 0x244   :  { %538 = vrcp.f32 %v293_v55 }
 0x247   :  { %v290_v56 = vpop.xlane.xlu1 %289 }
 0x248   :  { %540 = vrcp.f32 %v290_v56 }
 0x24e   :  { %v539_v57 = vpop.eup %538 }
 0x24f   :  { %v297_v58 = vmul.f32 %v539_v57, %v535_v49 }
 0x251   :  { %521 = vmatmul.mubr.msk.f32.vlgmr.msra.gmra.mrb[2].mxu1 %vm298_vm10, %v297_v58  ;;  %v453_v61 = vrot.slane %v297_v58, 7 }
 0x252   :  { %v541_v59 = vpop.eup %540 }
 0x253   :  { %v296_v60 = vmul.f32 %v541_v59, %v537_v51 }
 0x255   :  { %516 = vmatmul.mubr.msk.f32.vlgmr.msra.gmra.mrb[2].mxu0 %vm298_vm10, %v296_v60  ;;  %v454_v62 = vsel %vm448_vm11, %v453_v61, %v296_v60 }
 0x256   :  { %457 = vst.msk [vmem:[#allocation9] sm:$0x3] %vm456_vm12, %v454_v62 }
 0x257   :  { %619 = shalt.err (!%p616_p0)
}
 0x258   :  { %s620_s9 = scalar_lea.hbm %s785_s5, 32 }
 0x259   :  { %p621_p1 = scmp.ne.s32.totalorder %s785_s5, %s620_s9  ;;  %p624_p2 = scmp.lt.u32.totalorder %s620_s9, %s785_s5 }
 0x25b   :  { %p626_p3 = pnand %p624_p2, %p621_p1 }
 0x25d   :  { %629 = shalt.err (!%p626_p3)
}
 0x25e   :  { %477 = dma.vmem_to_hbm [thread:$0]  %s475_s29, 32, %s785_s5, [#allocation10]   ;;  %vm451_vm13 = vcmask 254976  }
 0x25f   :  { %s670_s16 = smov [#allocation8]  }
 0x260   :  { %s464_s17 = sshll.u32 %s670_s16, 4  ;;  %s465_s17 = int_to_ptr.vmem [resolvable:$true] %s464_s17 }
 0x261   :  { %s630_s1 = scalar_lea.vmem %s465_s17, 32  ;;  %p635_p5 = scmp.lt.s32.totalorder %s465_s17, %s465_s17 }
 0x262   :  { %p631_p4 = scmp.ne.s32.totalorder %s465_s17, %s630_s1  ;;  %p636_p6 = scmp.lt.s32.totalorder %s630_s1, %s630_s1 }
 0x264   :  { %p637_p7 = por %p636_p6, %p635_p5 }
 0x266   :  { %p638_p8 = pnand %p637_p7, %p631_p4 }
 0x324   :  { %v441_v63 = vpop.f32.mrb[2].mxu1 }
 0x325   :  { %v522_v0 = vpop.f32.mrb[3].mxu1  ;;  %v447_v1 = vrot.slane %v441_v63, 7 }
 0x328   :  { %v368_v2 = vpop.f32.mrb[2].mxu0 }
 0x329   :  { %v449_v3 = vsel %vm448_vm11, %v447_v1, %v368_v2  ;;  %v517_v4 = vpop.f32.mrb[3].mxu0 }
 0x32a   :  { %452 = vst.msk [vmem:[#allocation8] sm:$0x3] %vm451_vm13, %v449_v3 }
 0x32b   :  { %641 = shalt.err (!%p638_p8)
}
 0x32c   :  { %s642_s19 = scalar_lea.hbm %s784_s4, 32 }
 0x32d   :  { %p643_p9 = scmp.ne.s32.totalorder %s784_s4, %s642_s19  ;;  %p646_p10 = scmp.lt.u32.totalorder %s642_s19, %s784_s4 }
 0x32f   :  { %p648_p11 = pnand %p646_p10, %p643_p9 }
 0x331   :  { %651 = shalt.err (!%p648_p11)
}
 0x332   :  { %467 = dma.vmem_to_hbm [thread:$0]  %s465_s17, 32, %s784_s4, [#allocation4]  }
 0x333   :  { %656 = dma.done.wait [#allocation4], 32  }
 0x334   :  { %657 = vsyncadd [#allocation4], 4294967264 }
 0x335   :  { %658 = dma.done.wait [#allocation10], 32  }
 0x336   :  { %659 = vsyncadd [#allocation10], 4294967264 }
 0x337   :  { %484 = vsyncpa [#allocation3], 1 }
 0x338   :  { %485 = vsyncpa [#allocation6], 1 }
 0x339   :  { %486 = vsyncpa [#allocation4], 1 }
 0x33a   :  { %487 = vsyncpa [#allocation10], 1 }

</bundles_post_ra>
